<compile_context>
chip_gen: v7x
topology: tpu7x:2x2x1
jax: 0.10.0
libtpu: 0.0.40
codegen_flags: <defaults>
</compile_context>

<pallas_src>
import jax
import jax.numpy as jnp
from jax.experimental import pallas as pl
from jax.experimental.pallas import tpu as pltpu


_TARGET_BLOCK_BYTES = 8 * 1024 * 1024    # x bytes streamed per grid step
_MAX_TILE_B = 1024
_MAX_TILE_F = 8192
_SMALL_PROBLEM_ELEMS = 2 * 1024 * 1024   # below this, fused XLA matvec wins


def _round_up(x, m):
    return ((x + m - 1) // m) * m


def _round_down(x, m):
    return (x // m) * m


def _cdiv(a, b):
    return (a + b - 1) // b


def _make_logreg_kernel(*, tile_f, total_f, mask_last_f, acc_w):
    """Builds the kernel body; all keyword args are trace-time constants."""

    n_lane_tiles = tile_f // 128 if acc_w == 128 else 0

    def _fold(prod, acc_ref):
        # prod: (TILE_B, TILE_F) f32. Accumulate without touching the XLU on
        # the hot path: fold lane tiles with plain VPU adds.
        if acc_w == 128:
            partial = prod[:, 0:128]
            for j in range(1, n_lane_tiles):
                partial = partial + prod[:, j * 128:(j + 1) * 128]
            acc_ref[...] += partial
        else:
            # tile_f == total_f and not lane-aligned: single feature block,
            # so this cross-lane reduce runs exactly once per batch tile.
            acc_ref[...] += jnp.sum(prod, axis=-1, keepdims=True)

    def kernel(x_ref, w_ref, b_ref, o_ref, acc_ref):
        # Grid = (batch tiles [parallel], feature tiles [arbitrary/reduction]).
        k = pl.program_id(1)
        nk = pl.num_programs(1)

        @pl.when(k == 0)
        def _init():
            acc_ref[...] = jnp.zeros_like(acc_ref)

        # Multiply in the input dtype (bf16 stays bf16), accumulate in f32.
        prod = (x_ref[...] * w_ref[...]).astype(jnp.float32)

        if mask_last_f:
            # Ragged F: only the final feature block needs masking; keep the
            # iota/compare/select work off the hot loop.
            @pl.when(k != nk - 1)
            def _hot():
                _fold(prod, acc_ref)

            @pl.when(k == nk - 1)
            def _tail():
                col = (jax.lax.broadcasted_iota(jnp.int32, (1, tile_f), 1)
                       + k * tile_f)
                # Mask the product (not w): stale pad bytes in the last x
                # block could be NaN/Inf and NaN*0 would leak through a w-mask.
                _fold(jnp.where(col < total_f, prod, 0.0), acc_ref)
        else:
            _fold(prod, acc_ref)

        @pl.when(k == nk - 1)
        def _finalize():
            if acc_w == 128:
                row = jnp.sum(acc_ref[...], axis=-1, keepdims=True)
            else:
                row = acc_ref[...]
            logits = row + b_ref[0, 0]           # scalar bias from SMEM
            o_ref[...] = jax.nn.sigmoid(logits).astype(o_ref.dtype)

    return kernel


def _choose_tiles(B, F, itemsize):
    # >= 2 batch tiles whenever possible so v7x's two TensorCores both get
    # work via the "parallel" batch grid axis.
    tile_b = min(_MAX_TILE_B, max(8, _round_up(_cdiv(B, 2), 8)))
    # Grow the feature tile (not the batch tile) so one x block is ~8 MiB.
    target_f = max(128, _TARGET_BLOCK_BYTES // (tile_b * itemsize))
    tile_f = min(_MAX_TILE_F, max(128, _round_down(target_f, 128)))
    if tile_f >= F:
        tile_f = F          # single full-width feature block (any F allowed)
    return tile_b, tile_f


def logistic_regression_pallas(x, w, b, *, tile_b=None, tile_f=None):
    """sigmoid(x @ w.T + b) via Pallas.  x: (B, F), w: (1, F), b: (1,)."""
    B, F = x.shape
    assert w.shape == (1, F), w.shape

    w = w.astype(x.dtype)
    itemsize = jnp.dtype(x.dtype).itemsize
    out_dtype = x.dtype
    out_itemsize = jnp.dtype(out_dtype).itemsize

    auto_b, auto_f = _choose_tiles(B, F, itemsize)
    if tile_b is None:
        tile_b = auto_b
    if tile_f is None:
        tile_f = auto_f

    grid_b = _cdiv(B, tile_b)
    grid_f = _cdiv(F, tile_f)
    mask_last_f = (F % tile_f) != 0
    acc_w = 128 if (tile_f % 128 == 0) else 1

    kernel = _make_logreg_kernel(tile_f=tile_f, total_f=F,
                                 mask_last_f=mask_last_f, acc_w=acc_w)

    # Double-buffered x + w blocks, output blocks, accumulator scratch.
    vmem_needed = (2 * tile_b * tile_f * itemsize
                   + 2 * tile_f * itemsize
                   + 2 * tile_b * out_itemsize
                   + tile_b * acc_w * 4)
    # >= 32 MiB so the shared config also fits v5e's 16 MiB default scoped
    # VMEM; capped well under v7x's 64 MiB physical.
    vmem_limit = int(min(60 << 20, max(32 << 20, (vmem_needed * 3) // 2)))

    cost = pl.CostEstimate(
        flops=2 * B * F,
        transcendentals=B,
        bytes_accessed=B * F * itemsize + F * itemsize + B * out_itemsize,
    )

    return pl.pallas_call(
        kernel,
        out_shape=jax.ShapeDtypeStruct((B, 1), out_dtype),
        grid_spec=pltpu.PrefetchScalarGridSpec(
            num_scalar_prefetch=0,
            grid=(grid_b, grid_f),
            in_specs=[
                # x streamed in (TILE_B, TILE_F) blocks (auto double-buffered).
                pl.BlockSpec((tile_b, tile_f), lambda i, k: (i, k)),
                # Lane-dense weight row (1, TILE_F).
                pl.BlockSpec((1, tile_f), lambda i, k: (0, k)),
                # Bias scalar lives in SMEM.
                pl.BlockSpec(memory_space=pltpu.MemorySpace.SMEM),
            ],
            # Same output block across the reduction axis k -> accumulator.
            out_specs=pl.BlockSpec((tile_b, 1), lambda i, k: (i, 0)),
            scratch_shapes=[pltpu.VMEM((tile_b, acc_w), jnp.float32)],
        ),
        compiler_params=pltpu.CompilerParams(
            dimension_semantics=("parallel", "arbitrary"),
            vmem_limit_bytes=vmem_limit,
        ),
        cost_estimate=cost,
    )(x, w, b.reshape(1, 1).astype(jnp.float32))


def logistic_regression_forward(x, w, b):
    """Drop-in forward for the PyTorch module.  x: (..., F), w: (1, F), b: (1,)."""
    *lead, F = x.shape
    x2d = x.reshape(-1, F)
    B = x2d.shape[0]
    if B * F <= _SMALL_PROBLEM_ELEMS:
        # Small/medium sizes: custom-call + per-step overhead dominates;
        # XLA's fused matvec+sigmoid is already at roofline.
        out = jax.nn.sigmoid(x2d @ w.astype(x2d.dtype).T + b).astype(x2d.dtype)
    else:
        out = logistic_regression_pallas(x2d, w, b)
    return out.reshape(*lead, 1)


if __name__ == "__main__":
    def make_params(kw, kb, F, dtype=jnp.float32):
        # nn.Linear default init: U(-1/sqrt(F), 1/sqrt(F))
        bound = 1.0 / (F ** 0.5)
        w = jax.random.uniform(kw, (1, F), minval=-bound, maxval=bound,
                               dtype=jnp.float32).astype(dtype)
        b = jax.random.uniform(kb, (1,), minval=-bound, maxval=bound,
                               dtype=jnp.float32)
        return w, b

    def reference(x, w, b):
        xf = x.astype(jnp.float32)
        wf = w.astype(jnp.float32)
        return jax.nn.sigmoid(jnp.sum(xf * wf, axis=-1, keepdims=True)
                              + b.astype(jnp.float32))

    keys = jax.random.split(jax.random.PRNGKey(0), 16)

    # --- Test 1: default tiling — single feature block, grid_b = 2 so both
    #     v7x TensorCores get batch tiles. ---
    B, F = 512, 256
    x = jax.random.normal(keys[0], (B, F), dtype=jnp.float32)
    w, b = make_params(keys[1], keys[2], F)
    out = jax.block_until_ready(logistic_regression_pallas(x, w, b))
    assert out.shape == (B, 1)
    assert jnp.allclose(out, reference(x, w, b), atol=1e-5, rtol=1e-5)

    # --- Test 2: explicit small tiles — 2-D (batch, feature) grid, widened
    #     VPU accumulator, and the hoisted ragged-F mask on the last block. ---
    B2, F2 = 384, 200
    x2 = jax.random.normal(keys[3], (B2, F2), dtype=jnp.float32)
    w2, b2 = make_params(keys[4], keys[5], F2)
    out2 = jax.block_until_ready(
        logistic_regression_pallas(x2, w2, b2, tile_b=128, tile_f=128))
    assert out2.shape == (B2, 1)
    assert jnp.allclose(out2, reference(x2, w2, b2), atol=1e-5, rtol=1e-5)

    # --- Test 2b: same ragged-F input with default tiling (tile_f == F,
    #     non-lane-aligned single block -> width-1 accumulator path). ---
    out2b = jax.block_until_ready(logistic_regression_pallas(x2, w2, b2))
    assert jnp.allclose(out2b, reference(x2, w2, b2), atol=1e-5, rtol=1e-5)

    # --- Test 3: bf16 inputs — multiply in bf16, accumulate in f32, bf16 out. ---
    B3, F3 = 256, 384
    x3 = jax.random.normal(keys[6], (B3, F3), dtype=jnp.float32).astype(jnp.bfloat16)
    w3, b3 = make_params(keys[7], keys[8], F3, dtype=jnp.bfloat16)
    out3 = jax.block_until_ready(logistic_regression_pallas(x3, w3, b3))
    assert out3.shape == (B3, 1) and out3.dtype == jnp.bfloat16
    assert jnp.allclose(out3.astype(jnp.float32), reference(x3, w3, b3),
                        atol=3e-2, rtol=3e-2)

    # --- Test 4: forward() large enough to take the Pallas path (auto tiles). ---
    B4, F4 = 4096, 1024
    x4 = jax.random.normal(keys[9], (B4, F4), dtype=jnp.float32)
    w4, b4 = make_params(keys[10], keys[11], F4)
    out4 = jax.block_until_ready(logistic_regression_forward(x4, w4, b4))
    assert out4.shape == (B4, 1)
    assert jnp.allclose(out4, reference(x4, w4, b4), atol=1e-4, rtol=1e-4)

    # --- Test 5: tiny problem — forward() uses the fused XLA fallback. ---
    B5, F5 = 8, 32
    x5 = jax.random.normal(keys[12], (B5, F5), dtype=jnp.float32)
    w5, b5 = make_params(keys[13], keys[14], F5)
    out5 = jax.block_until_ready(logistic_regression_forward(x5, w5, b5))
    assert out5.shape == (B5, 1)
    assert jnp.allclose(out5, jax.nn.sigmoid(x5 @ w5.T + b5), atol=1e-5, rtol=1e-5)

    print("KERNEL_OK")
</pallas_src>

<mosaic_0001>
module attributes {stable_mosaic.version = 11 : i64} {
  func.func @kernel(%arg0: i32, %arg1: i32, %arg2: memref<256x256xf32, #tpu.memory_space<vmem>>, %arg3: memref<1x256xf32, #tpu.memory_space<vmem>>, %arg4: memref<1x1xf32, #tpu.memory_space<smem>>, %arg5: memref<256x1xf32, #tpu.memory_space<vmem>>, %arg6: memref<256x128xf32, #tpu.memory_space<vmem>>) attributes {dimension_semantics = [#tpu.dimension_semantics<parallel>, #tpu.dimension_semantics<arbitrary>], iteration_bounds = array<i64: 2, 1>, scalar_prefetch = 0 : i64, scratch_operands = 1 : i64, tpu.core_type = #tpu.core_type<tc>, window_params = [{transform_indices = @transform_0, window_bounds = array<i64: 256, 256>}, {transform_indices = @transform_1, window_bounds = array<i64: 1, 256>}, {transform_indices = @transform_2, window_bounds = array<i64: 1, 1>}, {transform_indices = @transform_3, window_bounds = array<i64: 256, 1>}]} {
    %c0_i32 = arith.constant 0 : i32
    %0 = arith.cmpi eq, %arg1, %c0_i32 : i32
    %1 = arith.extui %0 : i1 to i32
    %c0_i32_0 = arith.constant 0 : i32
    %2 = arith.cmpi ne, %1, %c0_i32_0 : i32
    scf.if %2 {
      %cst = arith.constant 0.000000e+00 : f32
      %16 = vector.broadcast %cst : f32 to vector<256x128xf32>
      %c0_10 = arith.constant 0 : index
      %c0_11 = arith.constant 0 : index
      %17 = vector.load %arg6[%c0_10, %c0_11] : memref<256x128xf32, #tpu.memory_space<vmem>>, vector<256x128xf32>
      tpu.vector_store %arg6[%c0_10, %c0_11], %16 {strides = array<i32>} : memref<256x128xf32, #tpu.memory_space<vmem>>, vector<256x128xf32>,
    } else {
    }
    %c0 = arith.constant 0 : index
    %c0_1 = arith.constant 0 : index
    %3 = vector.load %arg2[%c0, %c0_1] : memref<256x256xf32, #tpu.memory_space<vmem>>, vector<256x256xf32>
    %c0_2 = arith.constant 0 : index
    %c0_3 = arith.constant 0 : index
    %4 = vector.load %arg3[%c0_2, %c0_3] : memref<1x256xf32, #tpu.memory_space<vmem>>, vector<1x256xf32>
    %5 = vector.broadcast %4 : vector<1x256xf32> to vector<256x256xf32>
    %6 = arith.mulf %3, %5 : vector<256x256xf32>
    %7 = vector.extract_strided_slice %6 {offsets = [0, 0], sizes = [256, 128], strides = [1, 1]} : vector<256x256xf32> to vector<256x128xf32>
    %8 = vector.extract_strided_slice %6 {offsets = [0, 128], sizes = [256, 128], strides = [1, 1]} : vector<256x256xf32> to vector<256x128xf32>
    %9 = arith.addf %7, %8 : vector<256x128xf32>
    %c0_4 = arith.constant 0 : index
    %c0_5 = arith.constant 0 : index
    %10 = vector.load %arg6[%c0_4, %c0_5] : memref<256x128xf32, #tpu.memory_space<vmem>>, vector<256x128xf32>
    %11 = arith.addf %10, %9 : vector<256x128xf32>
    %c0_6 = arith.constant 0 : index
    %c0_7 = arith.constant 0 : index
    %12 = vector.load %arg6[%c0_6, %c0_7] : memref<256x128xf32, #tpu.memory_space<vmem>>, vector<256x128xf32>
    tpu.vector_store %arg6[%c0_6, %c0_7], %11 {strides = array<i32>} : memref<256x128xf32, #tpu.memory_space<vmem>>, vector<256x128xf32>,
    %c0_i32_8 = arith.constant 0 : i32
    %13 = arith.cmpi eq, %arg1, %c0_i32_8 : i32
    %14 = arith.extui %13 : i1 to i32
    %c0_i32_9 = arith.constant 0 : i32
    %15 = arith.cmpi ne, %14, %c0_i32_9 : i32
    scf.if %15 {
      %c0_10 = arith.constant 0 : index
      %c0_11 = arith.constant 0 : index
      %16 = vector.load %arg6[%c0_10, %c0_11] : memref<256x128xf32, #tpu.memory_space<vmem>>, vector<256x128xf32>
      %cst = arith.constant dense<0.000000e+00> : vector<256xf32>
      %17 = vector.multi_reduction <add>, %16, %cst [1] : vector<256x128xf32> to vector<256xf32>
      %18 = vector.shape_cast %17 : vector<256xf32> to vector<256x1xf32>
      %c0_12 = arith.constant 0 : index
      %c0_13 = arith.constant 0 : index
      %19 = memref.load %arg4[%c0_12, %c0_13] : memref<1x1xf32, #tpu.memory_space<smem>>
      %20 = vector.broadcast %19 : f32 to vector<256x1xf32>
      %21 = arith.addf %18, %20 : vector<256x1xf32>
      %22 = arith.negf %21 : vector<256x1xf32>
      %23 = math.exp %22 : vector<256x1xf32>
      %cst_14 = arith.constant 1.000000e+00 : f32
      %24 = vector.broadcast %cst_14 : f32 to vector<256x1xf32>
      %25 = arith.addf %24, %23 : vector<256x1xf32>
      %26 = arith.divf %24, %25 : vector<256x1xf32>
      %c0_15 = arith.constant 0 : index
      %c0_16 = arith.constant 0 : index
      %27 = vector.load %arg5[%c0_15, %c0_16] : memref<256x1xf32, #tpu.memory_space<vmem>>, vector<256x1xf32>
      tpu.vector_store %arg5[%c0_15, %c0_16], %26 {strides = array<i32>} : memref<256x1xf32, #tpu.memory_space<vmem>>, vector<256x1xf32>,
    } else {
    }
    return
  }
  func.func @transform_0(%arg0: i32, %arg1: i32) -> (i32, i32) {
    %c0_i32 = arith.constant 0 : i32
    return %arg0, %arg1 : i32, i32
  }
  func.func @transform_1(%arg0: i32, %arg1: i32) -> (i32, i32) {
    %c0_i32 = arith.constant 0 : i32
    %c0_i32_0 = arith.constant 0 : i32
    return %c0_i32, %arg1 : i32, i32
  }
  func.func @transform_2(%arg0: i32, %arg1: i32) -> (i32, i32) {
    %c0_i32 = arith.constant 0 : i32
    %c0_i32_0 = arith.constant 0 : i32
    %c0_i32_1 = arith.constant 0 : i32
    return %c0_i32, %c0_i32_0 : i32, i32
  }
  func.func @transform_3(%arg0: i32, %arg1: i32) -> (i32, i32) {
    %c0_i32 = arith.constant 0 : i32
    %c0_i32_0 = arith.constant 0 : i32
    return %arg0, %c0_i32 : i32, i32
  }
}

</mosaic_0001>

<bundles_post_ra>
// kernel: tpu_custom_call.1
= control target key start
LH: loop header
LB: loop body
LE: loop exit
PB: predicated region body
PF: predicated region fallthrough
CT: control target
= control target key end

     0   :  { %s1689_s0 = inlined_call_operand.hbm [shape: f32[512,256], index: 0, kind: input, shape index: {}]   ;;  %s1690_s1 = inlined_call_operand.vmem [shape: f32[1,256], index: 1, kind: input, shape index: {}]   ;;  %s1691_s2 = inlined_call_operand.<no memory space> [shape: f32[1,1], index: 2, kind: input, shape index: {}]   ;;  %s1692_s3 = inlined_call_operand.vmem [shape: f32[512,1], index: 3, kind: output, shape index: {}]  }
   0x1   :  { %8 = sst [smem:[#allocation3]] %s1691_s2 }
   0x2   :  { %9 = vsyncpa [#allocation5], 0 }
   0x3   :  { %11 = vsyncpa [#allocation5 + $0x1], 0  ;;  %s1326_s14 = smov 0   ;;  %s1328_s15 = smov 0  }
   0x4   :  { %s1330_s16 = smov 0   ;;  %s1332_s17 = smov 0  }
   0x5   :  { %s1334_s18 = smov 0   ;;  %s1336_s19 = smov 0  }
   0x6 LB: > { %s984_s2 = sadd.s32 4294967295, %s1298_s19   ;;  %s29_s20 = sadd.s32 1, %s1294_s18  ;;  %s1298_s19 = sphi %s1336_s19, %s17_s19   ;;  %s1294_s18 = sphi %s1334_s18, %s1700_s18   ;;  %s1290_s17 = sphi %s1332_s17, %s1699_s17   ;;  %s1286_s16 = sphi %s1330_s16, %s1698_s16   ;;  %s1282_s15 = sphi %s1328_s15, %s1697_s15   ;;  %s1278_s14 = sphi %s1326_s14, %s1696_s14  }
   0x7   : > { %p31_p0 = scmp.ge.s32.totalorder %s29_s20, 2  ;;  %s38_s21 = sadd.s32 1, %s1286_s16 }
   0x8   : > { %p45_p1 = scmp.ne.s32.totalorder %s1286_s16, %s1282_s15  ;;  %p46_p2 = scmp.eq.s32.totalorder %s1298_s19, 0 }
   0x9   : > { %s1702_s20 = smov (%p31_p0, %s29_s20), 0  ;;  %p51_p4 = scmp.ne.s32.totalorder %s1282_s15, %s1278_s14 }
   0xa   : > { %p1362_p3 = por %p46_p2, %p45_p1  ;;  %s33_s23 = ssub.s32 %s1294_s18, %s1702_s20 }
   0xb   : > { %p52_p5 = scmp.eq.s32.totalorder %s984_s2, 0  ;;  %p36_p6 = scmp.eq.s32.totalorder %s33_s23, 0 }
   0xc   : > { %p1039_p8 = scmp.lt.s32.totalorder %s1298_s19, 2  ;;  %s159_s26 = sand.u32 1, %s1286_s16  }
   0xd   : > { %p1369_p7 = por %p52_p5, %p51_p4  ;;  %s1032_s27 = sshll.u32 %s1294_s18, 13 }
   0xe   : > { %s1375_s25 = scalar_select %p36_p6, %s1286_s16, %s38_s21  }
   0xf   : > { %s989_s28 = sshll.u32 %s159_s26, 9  ;;  %s1382_s4 = scalar_lea.hbm %s1689_s0, %s1032_s27 }
  0x10   : > { %s163_s5 = scalar_lea.vmem [#allocation4], %s989_s28  ;;  %p1386_p9 = pnand %p1039_p8, %p1362_p3 }
  0x11   : > { %s173_s6 = sshll.u32 %s163_s5, 4  ;;  %s1392_s8 = scalar_lea.sflag [#allocation5], %s159_s26  ;;  %s1390_s6 = int_to_ptr.vmem [resolvable:$true] %s173_s6 }
  0x12   : > { %s1218_s9 = scalar_lea.hbm %s1382_s4, 8192  ;;  %p1220_p11 = pneg %p1386_p9 }
  0x13   : > { %p1219_p10 = scmp.ne.s32.totalorder %s1382_s4, %s1218_s9  ;;  %s1223_s12 = scalar_lea.hbm %s1689_s0, 16384 }
  0x14   : > { %p1224_p0 = scmp.lt.u32.totalorder %s1382_s4, %s1689_s0  ;;  %p1225_p1 = scmp.lt.u32.totalorder %s1223_s12, %s1218_s9 }
  0x15   : > { %p1221_p12 = pnand %p1220_p11, %p1219_p10  ;;  %p1227_p3 = scmp.lt.u32.totalorder %s1218_s9, %s1382_s4 }
  0x16   : > { %p1226_p2 = por %p1225_p1, %p1224_p0 }
  0x17   : > { %p1222_p13 = pneg %p1221_p12 }
  0x18   : > { %p1228_p4 = por %p1227_p3, %p1226_p2 }
  0x1a   : > { %p1229_p5 = pnand %p1228_p4, %p1222_p13 }
  0x1c   : > { %1232 = shalt.err (!%p1229_p5)
}
  0x1d   : > { %s1233_s2 = scalar_lea.vmem %s1390_s6, 8192  ;;  %s1300_s21 = smov [#allocation4]  }
  0x1e   : > { %p1234_p6 = scmp.ne.s32.totalorder %s1390_s6, %s1233_s2  ;;  %s1238_s22 = sshll.u32 %s1300_s21, 4  ;;  %s1239_s22 = int_to_ptr.vmem [resolvable:$false] %s1238_s22 }
  0x1f   : > { %s1240_s23 = scalar_lea.vmem %s1239_s22, 16384  ;;  %p1241_p12 = scmp.lt.s32.totalorder %s1390_s6, %s1239_s22 }
  0x20   : > { %p1236_p8 = pnand %p1234_p6, %p1220_p11  ;;  %p1242_p0 = scmp.lt.s32.totalorder %s1240_s23, %s1233_s2 }
  0x22   : > { %p1237_p10 = pneg %p1236_p8  ;;  %p1243_p1 = por %p1242_p0, %p1241_p12 }
  0x24   : > { %p1244_p2 = pnand %p1243_p1, %p1237_p10 }
  0x26   : > { %1247 = shalt.err (!%p1244_p2)
}
  0x27   : > { %s1301_s26 = smov 256   ;;  %s1302_s27 = smov 16  }
  0x28   : > { %1038 = dma.hbm_to_vmem [thread:$0]  (!%p1386_p9), %s1382_s4, 8192, %s1390_s6, %s1392_s8, %s1301_s26, %s1301_s26, %s1302_s27  }
  0x29   : > { %p993_p11 = scmp.ge.s32.totalorder %s1298_s19, 1  ;;  %p181_p13 = scmp.lt.s32.totalorder %s1298_s19, 3 }
  0x2b   : > { %p182_p3 = pnand %p993_p11, %p181_p13 }
  0x2c   : > { %s187_s28 = sand.u32 (!%p182_p3), 1, %s1282_s15  }
  0x2d   : > { %185 = sbr.rel (%p182_p3) target bundleno = 300 (0x12c), region = 32  ;;  %s994_s29 = sshll.u32 (!%p182_p3), %s187_s28, 9 }
  0x2e   : > { %s188_s30 = scalar_lea.sflag (!%p182_p3), [#allocation5], %s187_s28  ;;  %s1423_s5 = scalar_lea.vmem (!%p182_p3), [#allocation4], %s994_s29 }
  0x34   : > { %1273 = dma.done.wait (%p1369_p7), %s188_s30, 8192  }
  0x35   : > { %1275 = vsyncadd (%p1369_p7), %s188_s30, 4294959104  ;;  %v333_v0 = vlaneseq  ;;  %v271_v4 = vld [vmem:[%s1423_s5 + $0x20] sm:$0xff]  ;;  %v272_v5 = vld [vmem:[%s1423_s5 + $0x28] sm:$0xff]  ;;  %s634_s24 = sld [smem:[#allocation3]]  ;;  %s995_s7 = sshll.u32 %s1290_s17, 5  ;;  %vm860_vm0 = vcmask 7168  }
  0x36   : > { %v331_v6 = vld [vmem:[%s1690_s1] sm:$0x3]  ;;  %v268_v10 = vld [vmem:[%s1423_s5 + $0x8] sm:$0xff]  ;;  %v273_v11 = vld [vmem:[%s1423_s5 + $0x30] sm:$0xff]  ;;  %p226_p7 = scmp.lt.s32.totalorder %s995_s7, 63 }
  0x37   : > { %v334_v1 = vshrl.u32 %v333_v0, 7  ;;  %v267_v9 = vld [vmem:[%s1423_s5] sm:$0xff]  ;;  %v274_v12 = vld [vmem:[%s1423_s5 + $0x38] sm:$0xff]  ;;  %v269_v13 = vld [vmem:[%s1423_s5 + $0x10] sm:$0xff] }
  0x38   : > { %v270_v14 = vld [vmem:[%s1423_s5 + $0x18] sm:$0xff]  ;;  %v277_v19 = vld [vmem:[%s1423_s5 + $0x50] sm:$0xff]  ;;  %v275_v25 = vld [vmem:[%s1423_s5 + $0x40] sm:$0xff]  ;;  %s1704_s7 = smov (!%p226_p7, %s995_s7), 63 }
  0x39   : > { %v335_v2 = vsub.s32 0, %v334_v1  ;;  %v339_v3 = vsub.s32 1, %v334_v1  ;;  %v278_v20 = vld [vmem:[%s1423_s5 + $0x58] sm:$0xff]  ;;  %v276_v26 = vld [vmem:[%s1423_s5 + $0x48] sm:$0xff]  ;;  %v281_v35 = vld [vmem:[%s1423_s5 + $0x70] sm:$0xff]  ;;  %s996_s17 = sshll.u32 %s1704_s7, 3 }
  0x3a   : > { %v282_v36 = vld [vmem:[%s1423_s5 + $0x78] sm:$0xff]  ;;  %v279_v37 = vld [vmem:[%s1423_s5 + $0x60] sm:$0xff]  ;;  %v280_v38 = vld [vmem:[%s1423_s5 + $0x68] sm:$0xff]  ;;  %s1587_s10 = scalar_lea.vmem %s1692_s3, %s996_s17 }
  0x3b   : > { %v1434_v7 = vrot.slane %v331_v6, %v335_v2  ;;  %v1436_v8 = vrot.slane %v331_v6, %v339_v3  ;;  %v285_v45 = vld [vmem:[%s1423_s5 + $0x90] sm:$0xff]  ;;  %v286_v46 = vld [vmem:[%s1423_s5 + $0x98] sm:$0xff]  ;;  %v283_v47 = vld [vmem:[%s1423_s5 + $0x80] sm:$0xff] }
  0x3c   : > { %v284_v48 = vld [vmem:[%s1423_s5 + $0x88] sm:$0xff]  ;;  %v289_v55 = vld [vmem:[%s1423_s5 + $0xb0] sm:$0xff]  ;;  %v290_v56 = vld [vmem:[%s1423_s5 + $0xb8] sm:$0xff] }
  0x3d   : > { %v347_v15 = vmul.f32 %v1434_v7, %v271_v4  ;;  %v348_v16 = vmul.f32 %v1436_v8, %v272_v5  ;;  %v343_v17 = vmul.f32 %v1434_v7, %v267_v9  ;;  %v344_v18 = vmul.f32 %v1436_v8, %v268_v10  ;;  %v287_v57 = vld [vmem:[%s1423_s5 + $0xa0] sm:$0xff]  ;;  %v288_v58 = vld [vmem:[%s1423_s5 + $0xa8] sm:$0xff]  ;;  %v293_v1 = vld [vmem:[%s1423_s5 + $0xd0] sm:$0xff] }
  0x3e   : > { %v349_v21 = vmul.f32 %v1434_v7, %v273_v11  ;;  %v350_v22 = vmul.f32 %v1436_v8, %v274_v12  ;;  %v345_v23 = vmul.f32 %v1434_v7, %v269_v13  ;;  %v346_v24 = vmul.f32 %v1436_v8, %v270_v14  ;;  %v294_v2 = vld [vmem:[%s1423_s5 + $0xd8] sm:$0xff]  ;;  %v291_v3 = vld [vmem:[%s1423_s5 + $0xc0] sm:$0xff]  ;;  %v292_v4 = vld [vmem:[%s1423_s5 + $0xc8] sm:$0xff] }
  0x3f   : > { %v409_v27 = vadd.f32 %v348_v16, %v347_v15  ;;  %v407_v28 = vadd.f32 %v344_v18, %v343_v17  ;;  %v353_v30 = vmul.f32 %v1434_v7, %v277_v19  ;;  %v354_v31 = vmul.f32 %v1436_v8, %v278_v20  ;;  %v297_v13 = vld [vmem:[%s1423_s5 + $0xf0] sm:$0xff]  ;;  %v298_v14 = vld [vmem:[%s1423_s5 + $0xf8] sm:$0xff]  ;;  %v295_v15 = vld [vmem:[%s1423_s5 + $0xe0] sm:$0xff] }
  0x40   : > { %v410_v29 = vadd.f32 %v350_v22, %v349_v21  ;;  %v408_v32 = vadd.f32 %v346_v24, %v345_v23  ;;  %v351_v33 = vmul.f32 %v1434_v7, %v275_v25  ;;  %v352_v34 = vmul.f32 %v1436_v8, %v276_v26  ;;  %v296_v16 = vld [vmem:[%s1423_s5 + $0xe8] sm:$0xff]  ;;  %v301_v23 = vld [vmem:[%s1423_s5 + $0x110] sm:$0xff]  ;;  %v302_v24 = vld [vmem:[%s1423_s5 + $0x118] sm:$0xff] }
  0x41   : > { %574 = vadd.xlane.f32.xlu1 %v409_v27  ;;  %570 = vadd.xlane.f32.xlu0 %v407_v28  ;;  %v412_v39 = vadd.f32 %v354_v31, %v353_v30  ;;  %v357_v40 = vmul.f32 %v1434_v7, %v281_v35  ;;  %v358_v41 = vmul.f32 %v1436_v8, %v282_v36  ;;  %v299_v25 = vld [vmem:[%s1423_s5 + $0x100] sm:$0xff]  ;;  %v300_v26 = vld [vmem:[%s1423_s5 + $0x108] sm:$0xff] }
  0x42   : > { %v411_v42 = vadd.f32 %v352_v34, %v351_v33  ;;  %v355_v43 = vmul.f32 %v1434_v7, %v279_v37  ;;  %v356_v44 = vmul.f32 %v1436_v8, %v280_v38  ;;  %v361_v50 = vmul.f32 %v1434_v7, %v285_v45  ;;  %v305_v33 = vld [vmem:[%s1423_s5 + $0x130] sm:$0xff]  ;;  %v306_v34 = vld [vmem:[%s1423_s5 + $0x138] sm:$0xff]  ;;  %v303_v35 = vld [vmem:[%s1423_s5 + $0x120] sm:$0xff] }
  0x43   : > { %v414_v49 = vadd.f32 %v358_v41, %v357_v40  ;;  %v362_v51 = vmul.f32 %v1436_v8, %v286_v46  ;;  %v359_v53 = vmul.f32 %v1434_v7, %v283_v47  ;;  %v360_v54 = vmul.f32 %v1436_v8, %v284_v48  ;;  %v304_v36 = vld [vmem:[%s1423_s5 + $0x128] sm:$0xff]  ;;  %v307_v45 = vld [vmem:[%s1423_s5 + $0x140] sm:$0xff] }
  0x44   : > { %v413_v52 = vadd.f32 %v356_v44, %v355_v43  ;;  %v365_v59 = vmul.f32 %v1434_v7, %v289_v55  ;;  %v366_v60 = vmul.f32 %v1436_v8, %v290_v56  ;;  %v363_v61 = vmul.f32 %v1434_v7, %v287_v57  ;;  %v309_v43 = vld [vmem:[%s1423_s5 + $0x150] sm:$0xff]  ;;  %v310_v44 = vld [vmem:[%s1423_s5 + $0x158] sm:$0xff]  ;;  %v308_v46 = vld [vmem:[%s1423_s5 + $0x148] sm:$0xff] }
  0x45   : > { %576 = vadd.xlane.f32.xlu1 %v410_v29  ;;  %572 = vadd.xlane.f32.xlu0 %v408_v32  ;;  %v416_v62 = vadd.f32 %v362_v51, %v361_v50  ;;  %v415_v63 = vadd.f32 %v360_v54, %v359_v53  ;;  %v364_v0 = vmul.f32 %v1436_v8, %v288_v58  ;;  %v313_v53 = vld [vmem:[%s1423_s5 + $0x170] sm:$0xff]  ;;  %v314_v54 = vld [vmem:[%s1423_s5 + $0x178] sm:$0xff]  ;;  %v311_v55 = vld [vmem:[%s1423_s5 + $0x160] sm:$0xff] }
  0x46   : > { %v418_v5 = vadd.f32 %v366_v60, %v365_v59  ;;  %v369_v6 = vmul.f32 %v1434_v7, %v293_v1  ;;  %v370_v9 = vmul.f32 %v1436_v8, %v294_v2  ;;  %v367_v11 = vmul.f32 %v1434_v7, %v291_v3  ;;  %v312_v56 = vld [vmem:[%s1423_s5 + $0x168] sm:$0xff]  ;;  %v315_v1 = vld [vmem:[%s1423_s5 + $0x180] sm:$0xff] }
  0x47   : > { %v417_v10 = vadd.f32 %v364_v0, %v363_v61  ;;  %v368_v12 = vmul.f32 %v1436_v8, %v292_v4  ;;  %v373_v18 = vmul.f32 %v1434_v7, %v297_v13  ;;  %v374_v19 = vmul.f32 %v1436_v8, %v298_v14  ;;  %v318_v0 = vld [vmem:[%s1423_s5 + $0x198] sm:$0xff]  ;;  %v316_v2 = vld [vmem:[%s1423_s5 + $0x188] sm:$0xff]  ;;  %v319_v13 = vld [vmem:[%s1423_s5 + $0x1a0] sm:$0xff] }
  0x48   : > { %v420_v17 = vadd.f32 %v370_v9, %v369_v6  ;;  %v371_v21 = vmul.f32 %v1434_v7, %v295_v15  ;;  %v372_v22 = vmul.f32 %v1436_v8, %v296_v16  ;;  %v377_v28 = vmul.f32 %v1434_v7, %v301_v23  ;;  %v320_v14 = vld [vmem:[%s1423_s5 + $0x1a8] sm:$0xff]  ;;  %v323_v23 = vld [vmem:[%s1423_s5 + $0x1c0] sm:$0xff] }
  0x49   : > { %580 = vadd.xlane.f32.xlu1 %v412_v39  ;;  %578 = vadd.xlane.f32.xlu0 %v411_v42  ;;  %v419_v20 = vadd.f32 %v368_v12, %v367_v11  ;;  %v422_v27 = vadd.f32 %v374_v19, %v373_v18  ;;  %v378_v29 = vmul.f32 %v1436_v8, %v302_v24  ;;  %v321_v11 = vld [vmem:[%s1423_s5 + $0x1b0] sm:$0xff]  ;;  %v322_v12 = vld [vmem:[%s1423_s5 + $0x1b8] sm:$0xff]  ;;  %v324_v24 = vld [vmem:[%s1423_s5 + $0x1c8] sm:$0xff] }
  0x4a   : > { %v421_v30 = vadd.f32 %v372_v22, %v371_v21  ;;  %v375_v31 = vmul.f32 %v1434_v7, %v299_v25  ;;  %v376_v32 = vmul.f32 %v1436_v8, %v300_v26  ;;  %v381_v38 = vmul.f32 %v1434_v7, %v305_v33  ;;  %v325_v21 = vld [vmem:[%s1423_s5 + $0x1d0] sm:$0xff]  ;;  %v326_v22 = vld [vmem:[%s1423_s5 + $0x1d8] sm:$0xff]  ;;  %v327_v33 = vld [vmem:[%s1423_s5 + $0x1e0] sm:$0xff] }
  0x4b   : > { %v424_v37 = vadd.f32 %v378_v29, %v377_v28  ;;  %v382_v39 = vmul.f32 %v1436_v8, %v306_v34  ;;  %v379_v41 = vmul.f32 %v1434_v7, %v303_v35  ;;  %v380_v42 = vmul.f32 %v1436_v8, %v304_v36  ;;  %v328_v34 = vld [vmem:[%s1423_s5 + $0x1e8] sm:$0xff] }
  0x4c   : > { %v423_v40 = vadd.f32 %v376_v32, %v375_v31  ;;  %v385_v47 = vmul.f32 %v1434_v7, %v309_v43  ;;  %v386_v48 = vmul.f32 %v1436_v8, %v310_v44  ;;  %v389_v58 = vmul.f32 %v1434_v7, %v313_v53  ;;  %v329_v31 = vld [vmem:[%s1423_s5 + $0x1f0] sm:$0xff]  ;;  %v330_v32 = vld [vmem:[%s1423_s5 + $0x1f8] sm:$0xff] }
  0x4d   : > { %584 = vadd.xlane.f32.xlu1 %v414_v49  ;;  %582 = vadd.xlane.f32.xlu0 %v413_v52  ;;  %v383_v49 = vmul.f32 %v1434_v7, %v307_v45  ;;  %v426_v50 = vadd.f32 %v382_v39, %v381_v38  ;;  %v425_v51 = vadd.f32 %v380_v42, %v379_v41  ;;  %v1564_v43 = vstv %s634_s24 }
  0x4e   : > { %v384_v52 = vmul.f32 %v1436_v8, %v308_v46  ;;  %v428_v57 = vadd.f32 %v386_v48, %v385_v47  ;;  %v390_v59 = vmul.f32 %v1436_v8, %v314_v54  ;;  %v387_v61 = vmul.f32 %v1434_v7, %v311_v55 }
  0x4f   : > { %v391_v9 = vmul.f32 %v1434_v7, %v315_v1  ;;  %v397_v16 = vmul.f32 %v1434_v7, %v321_v11  ;;  %v395_v19 = vmul.f32 %v1434_v7, %v319_v13  ;;  %v401_v26 = vmul.f32 %v1434_v7, %v325_v21 }
  0x50   : > { %v427_v60 = vadd.f32 %v384_v52, %v383_v49  ;;  %v430_v3 = vadd.f32 %v390_v59, %v389_v58  ;;  %v399_v29 = vmul.f32 %v1434_v7, %v323_v23  ;;  %v405_v35 = vmul.f32 %v1434_v7, %v329_v31 }
  0x51   : > { %588 = vadd.xlane.f32.xlu1 %v416_v62  ;;  %586 = vadd.xlane.f32.xlu0 %v415_v63  ;;  %v388_v62 = vmul.f32 %v1436_v8, %v312_v56  ;;  %v317_v63 = vld [vmem:[%s1423_s5 + $0x190] sm:$0xff]  ;;  %v406_v36 = vmul.f32 %v1436_v8, %v330_v32 }
  0x52   : > { %v393_v4 = vmul.f32 %v1434_v7, %v317_v63 }
  0x53   : > { %v429_v6 = vadd.f32 %v388_v62, %v387_v61  ;;  %v438_v41 = vadd.f32 %v406_v36, %v405_v35 }
  0x55   : > { %592 = vadd.xlane.f32.xlu1 %v418_v5  ;;  %590 = vadd.xlane.f32.xlu0 %v417_v10  ;;  %v394_v5 = vmul.f32 %v1436_v8, %v318_v0  ;;  %v392_v10 = vmul.f32 %v1436_v8, %v316_v2 }
  0x57   : > { %v432_v15 = vadd.f32 %v394_v5, %v393_v4  ;;  %v431_v18 = vadd.f32 %v392_v10, %v391_v9 }
  0x59   : > { %596 = vadd.xlane.f32.xlu1 %v420_v17  ;;  %594 = vadd.xlane.f32.xlu0 %v419_v20  ;;  %v398_v17 = vmul.f32 %v1436_v8, %v322_v12  ;;  %v396_v20 = vmul.f32 %v1436_v8, %v320_v14 }
  0x5b   : > { %v434_v25 = vadd.f32 %v398_v17, %v397_v16  ;;  %v433_v28 = vadd.f32 %v396_v20, %v395_v19 }
  0x5d   : > { %600 = vadd.xlane.f32.xlu1 %v422_v27  ;;  %598 = vadd.xlane.f32.xlu0 %v421_v30  ;;  %v402_v27 = vmul.f32 %v1436_v8, %v326_v22  ;;  %v400_v30 = vmul.f32 %v1436_v8, %v324_v24 }
  0x5f   : > { %v436_v38 = vadd.f32 %v402_v27, %v401_v26  ;;  %v435_v39 = vadd.f32 %v400_v30, %v399_v29 }
  0x61   : > { %604 = vadd.xlane.f32.xlu1 %v424_v37  ;;  %602 = vadd.xlane.f32.xlu0 %v423_v40  ;;  %v403_v37 = vmul.f32 %v1434_v7, %v327_v33  ;;  %v404_v40 = vmul.f32 %v1436_v8, %v328_v34 }
  0x63   : > { %v437_v42 = vadd.f32 %v404_v40, %v403_v37 }
  0x65   : > { %608 = vadd.xlane.f32.xlu1 %v426_v50  ;;  %606 = vadd.xlane.f32.xlu0 %v425_v51 }
  0x69   : > { %612 = vadd.xlane.f32.xlu1 %v428_v57  ;;  %610 = vadd.xlane.f32.xlu0 %v427_v60 }
  0x6d   : > { %616 = vadd.xlane.f32.xlu1 %v430_v3  ;;  %614 = vadd.xlane.f32.xlu0 %v429_v6 }
  0x71   : > { %620 = vadd.xlane.f32.xlu1 %v432_v15  ;;  %618 = vadd.xlane.f32.xlu0 %v431_v18 }
  0x75   : > { %624 = vadd.xlane.f32.xlu1 %v434_v25  ;;  %622 = vadd.xlane.f32.xlu0 %v433_v28 }
  0x79   : > { %628 = vadd.xlane.f32.xlu1 %v436_v38  ;;  %626 = vadd.xlane.f32.xlu0 %v435_v39 }
  0x7d   : > { %632 = vadd.xlane.f32.xlu1 %v438_v41  ;;  %630 = vadd.xlane.f32.xlu0 %v437_v42 }
  0xce   : > { %v575_v44 = vpop.xlane.xlu1 %574  ;;  %v571_v45 = vpop.xlane.xlu0 %570 }
  0xcf   : > { %v638_v46 = vadd.f32 %v1564_v43, %v575_v44  ;;  %v636_v7 = vadd.f32 %v1564_v43, %v571_v45 }
  0xd1   : > { %v999_v47 = vmul.f32 -1.442695, %v638_v46  ;;  %v997_v48 = vmul.f32 -1.442695, %v636_v7 }
  0xd2   : > { %v577_v49 = vpop.xlane.xlu1 %576  ;;  %v573_v8 = vpop.xlane.xlu0 %572 }
  0xd3   : > { %1090 = vpow2.f32 %v999_v47  ;;  %v639_v50 = vadd.f32 %v1564_v43, %v577_v49  ;;  %v637_v51 = vadd.f32 %v1564_v43, %v573_v8 }
  0xd4   : > { %1092 = vpow2.f32 %v997_v48 }
  0xd5   : > { %v1000_v52 = vmul.f32 -1.442695, %v639_v50  ;;  %v998_v53 = vmul.f32 -1.442695, %v637_v51 }
  0xd6   : > { %v581_v54 = vpop.xlane.xlu1 %580  ;;  %v579_v55 = vpop.xlane.xlu0 %578 }
  0xd7   : > { %1094 = vpow2.f32 %v1000_v52  ;;  %v641_v56 = vadd.f32 %v1564_v43, %v581_v54  ;;  %v640_v57 = vadd.f32 %v1564_v43, %v579_v55 }
  0xd8   : > { %1096 = vpow2.f32 %v998_v53 }
  0xd9   : > { %v1002_v58 = vmul.f32 -1.442695, %v641_v56  ;;  %v1001_v59 = vmul.f32 -1.442695, %v640_v57 }
  0xda   : > { %v585_v60 = vpop.xlane.xlu1 %584  ;;  %v583_v61 = vpop.xlane.xlu0 %582 }
  0xdb   : > { %1098 = vpow2.f32 %v1002_v58  ;;  %v643_v62 = vadd.f32 %v1564_v43, %v585_v60  ;;  %v642_v63 = vadd.f32 %v1564_v43, %v583_v61 }
  0xdc   : > { %1100 = vpow2.f32 %v1001_v59 }
  0xdd   : > { %v1091_v0 = vpop.eup %1090  ;;  %v1004_v1 = vmul.f32 -1.442695, %v643_v62  ;;  %v1003_v4 = vmul.f32 -1.442695, %v642_v63 }
  0xde   : > { %v1093_v2 = vpop.eup %1092  ;;  %v766_v3 = vadd.f32 1.0, %v1091_v0  ;;  %v589_v5 = vpop.xlane.xlu1 %588 }
  0xdf   : > { %v587_v6 = vpop.xlane.xlu0 %586  ;;  %v764_v9 = vadd.f32 1.0, %v1093_v2  ;;  %1102 = vpow2.f32 %v1004_v1  ;;  %v645_v10 = vadd.f32 %v1564_v43, %v589_v5 }
  0xe0   : > { %v644_v11 = vadd.f32 %v1564_v43, %v587_v6  ;;  %1104 = vrcp.f32 %v766_v3 }
  0xe1   : > { %v1095_v12 = vpop.eup %1094  ;;  %1106 = vrcp.f32 %v764_v9  ;;  %v1006_v13 = vmul.f32 -1.442695, %v645_v10 }
  0xe2   : > { %v1097_v14 = vpop.eup %1096  ;;  %v767_v15 = vadd.f32 1.0, %v1095_v12  ;;  %1108 = vpow2.f32 %v1003_v4  ;;  %v1005_v16 = vmul.f32 -1.442695, %v644_v11  ;;  %v593_v17 = vpop.xlane.xlu1 %592 }
  0xe3   : > { %v591_v18 = vpop.xlane.xlu0 %590  ;;  %v765_v19 = vadd.f32 1.0, %v1097_v14  ;;  %1110 = vpow2.f32 %v1006_v13  ;;  %v647_v20 = vadd.f32 %v1564_v43, %v593_v17 }
  0xe4   : > { %v646_v21 = vadd.f32 %v1564_v43, %v591_v18  ;;  %1112 = vrcp.f32 %v767_v15 }
  0xe5   : > { %v1099_v22 = vpop.eup %1098  ;;  %1114 = vrcp.f32 %v765_v19  ;;  %v1008_v23 = vmul.f32 -1.442695, %v647_v20 }
  0xe6   : > { %v1101_v24 = vpop.eup %1100  ;;  %v769_v25 = vadd.f32 1.0, %v1099_v22  ;;  %1116 = vpow2.f32 %v1005_v16  ;;  %v1007_v26 = vmul.f32 -1.442695, %v646_v21  ;;  %v597_v27 = vpop.xlane.xlu1 %596 }
  0xe7   : > { %v595_v28 = vpop.xlane.xlu0 %594  ;;  %v768_v29 = vadd.f32 1.0, %v1101_v24  ;;  %1118 = vpow2.f32 %v1008_v23  ;;  %v649_v30 = vadd.f32 %v1564_v43, %v597_v27 }
  0xe8   : > { %v648_v31 = vadd.f32 %v1564_v43, %v595_v28  ;;  %1120 = vrcp.f32 %v769_v25 }
  0xe9   : > { %v1103_v32 = vpop.eup %1102  ;;  %1122 = vrcp.f32 %v768_v29  ;;  %v1010_v33 = vmul.f32 -1.442695, %v649_v30 }
  0xea   : > { %v1009_v34 = vmul.f32 -1.442695, %v648_v31  ;;  %v1105_v35 = vpop.eup %1104  ;;  %v771_v36 = vadd.f32 1.0, %v1103_v32  ;;  %1124 = vpow2.f32 %v1007_v26  ;;  %v601_v37 = vpop.xlane.xlu1 %600 }
  0xeb   : > { %v599_v38 = vpop.xlane.xlu0 %598  ;;  %v1107_v39 = vpop.eup %1106  ;;  %863 = vst.msk [vmem:[%s1587_s10 + $0x10] sm:$0xff] %vm860_vm0, %v1105_v35  ;;  %1126 = vpow2.f32 %v1010_v33  ;;  %v651_v40 = vadd.f32 %v1564_v43, %v601_v37 }
  0xec   : > { %v650_v41 = vadd.f32 %v1564_v43, %v599_v38  ;;  %v1109_v42 = vpop.eup %1108  ;;  %861 = vst.msk [vmem:[%s1587_s10] sm:$0xff] %vm860_vm0, %v1107_v39  ;;  %1128 = vrcp.f32 %v771_v36 }
  0xed   : > { %v1111_v44 = vpop.eup %1110  ;;  %v770_v45 = vadd.f32 1.0, %v1109_v42  ;;  %1130 = vpow2.f32 %v1009_v34  ;;  %v1012_v46 = vmul.f32 -1.442695, %v651_v40 }
  0xee   : > { %v1113_v7 = vpop.eup %1112  ;;  %v773_v47 = vadd.f32 1.0, %v1111_v44  ;;  %v1011_v48 = vmul.f32 -1.442695, %v650_v41  ;;  %v605_v49 = vpop.xlane.xlu1 %604 }
  0xef   : > { %v603_v8 = vpop.xlane.xlu0 %602  ;;  %v1115_v50 = vpop.eup %1114  ;;  %864 = vst.msk [vmem:[%s1587_s10 + $0x18] sm:$0xff] %vm860_vm0, %v1113_v7  ;;  %1132 = vrcp.f32 %v770_v45  ;;  %v653_v51 = vadd.f32 %v1564_v43, %v605_v49 }
  0xf0   : > { %v652_v52 = vadd.f32 %v1564_v43, %v603_v8  ;;  %v1117_v53 = vpop.eup %1116  ;;  %862 = vst.msk [vmem:[%s1587_s10 + $0x8] sm:$0xff] %vm860_vm0, %v1115_v50  ;;  %1134 = vrcp.f32 %v773_v47 }
  0xf1   : > { %v1119_v54 = vpop.eup %1118  ;;  %v772_v55 = vadd.f32 1.0, %v1117_v53  ;;  %1136 = vpow2.f32 %v1012_v46  ;;  %v1014_v56 = vmul.f32 -1.442695, %v653_v51 }
  0xf2   : > { %v1121_v57 = vpop.eup %1120  ;;  %v775_v58 = vadd.f32 1.0, %v1119_v54  ;;  %1138 = vpow2.f32 %v1011_v48  ;;  %v1013_v59 = vmul.f32 -1.442695, %v652_v52  ;;  %v609_v60 = vpop.xlane.xlu1 %608 }
  0xf3   : > { %v607_v61 = vpop.xlane.xlu0 %606  ;;  %v1123_v62 = vpop.eup %1122  ;;  %866 = vst.msk [vmem:[%s1587_s10 + $0x28] sm:$0xff] %vm860_vm0, %v1121_v57  ;;  %1140 = vrcp.f32 %v772_v55  ;;  %v655_v63 = vadd.f32 %v1564_v43, %v609_v60 }
  0xf4   : > { %v654_v0 = vadd.f32 %v1564_v43, %v607_v61  ;;  %v1125_v1 = vpop.eup %1124  ;;  %865 = vst.msk [vmem:[%s1587_s10 + $0x20] sm:$0xff] %vm860_vm0, %v1123_v62  ;;  %1142 = vrcp.f32 %v775_v58 }
  0xf5   : > { %v1127_v2 = vpop.eup %1126  ;;  %v774_v3 = vadd.f32 1.0, %v1125_v1  ;;  %1144 = vpow2.f32 %v1014_v56  ;;  %v1016_v4 = vmul.f32 -1.442695, %v655_v63 }
  0xf6   : > { %v1129_v5 = vpop.eup %1128  ;;  %v777_v6 = vadd.f32 1.0, %v1127_v2  ;;  %1146 = vpow2.f32 %v1013_v59  ;;  %v613_v9 = vpop.xlane.xlu1 %612  ;;  %v1015_v12 = vmul.f32 -1.442695, %v654_v0 }
  0xf7   : > { %v611_v10 = vpop.xlane.xlu0 %610  ;;  %v1131_v11 = vpop.eup %1130  ;;  %868 = vst.msk [vmem:[%s1587_s10 + $0x38] sm:$0xff] %vm860_vm0, %v1129_v5  ;;  %1148 = vrcp.f32 %v774_v3  ;;  %v657_v13 = vadd.f32 %v1564_v43, %v613_v9 }
  0xf8   : > { %v656_v14 = vadd.f32 %v1564_v43, %v611_v10  ;;  %1150 = vrcp.f32 %v777_v6  ;;  %v776_v15 = vadd.f32 1.0, %v1131_v11 }
  0xf9   : > { %v1133_v16 = vpop.eup %1132  ;;  %1152 = vpow2.f32 %v1016_v4  ;;  %v1018_v17 = vmul.f32 -1.442695, %v657_v13 }
  0xfa   : > { %v1017_v18 = vmul.f32 -1.442695, %v656_v14  ;;  %v1135_v19 = vpop.eup %1134  ;;  %867 = vst.msk [vmem:[%s1587_s10 + $0x30] sm:$0xff] %vm860_vm0, %v1133_v16  ;;  %1154 = vrcp.f32 %v776_v15  ;;  %v617_v20 = vpop.xlane.xlu1 %616 }
  0xfb   : > { %v615_v21 = vpop.xlane.xlu0 %614  ;;  %v1137_v22 = vpop.eup %1136  ;;  %870 = vst.msk [vmem:[%s1587_s10 + $0x48] sm:$0xff] %vm860_vm0, %v1135_v19  ;;  %1156 = vpow2.f32 %v1015_v12  ;;  %v659_v23 = vadd.f32 %v1564_v43, %v617_v20 }
  0xfc   : > { %v658_v24 = vadd.f32 %v1564_v43, %v615_v21  ;;  %v1139_v25 = vpop.eup %1138  ;;  %v779_v26 = vadd.f32 1.0, %v1137_v22  ;;  %1158 = vpow2.f32 %v1018_v17 }
  0xfd   : > { %v1141_v27 = vpop.eup %1140  ;;  %v778_v28 = vadd.f32 1.0, %v1139_v25  ;;  %1160 = vpow2.f32 %v1017_v18  ;;  %v1020_v29 = vmul.f32 -1.442695, %v659_v23 }
  0xfe   : > { %v1019_v30 = vmul.f32 -1.442695, %v658_v24  ;;  %v1143_v31 = vpop.eup %1142  ;;  %869 = vst.msk [vmem:[%s1587_s10 + $0x40] sm:$0xff] %vm860_vm0, %v1141_v27  ;;  %1162 = vrcp.f32 %v779_v26  ;;  %v621_v32 = vpop.xlane.xlu1 %620 }
  0xff   : > { %v619_v33 = vpop.xlane.xlu0 %618  ;;  %v1145_v34 = vpop.eup %1144  ;;  %872 = vst.msk [vmem:[%s1587_s10 + $0x58] sm:$0xff] %vm860_vm0, %v1143_v31  ;;  %1164 = vrcp.f32 %v778_v28  ;;  %v661_v35 = vadd.f32 %v1564_v43, %v621_v32 }
 0x100   : > { %v660_v36 = vadd.f32 %v1564_v43, %v619_v33  ;;  %v1147_v37 = vpop.eup %1146  ;;  %v781_v38 = vadd.f32 1.0, %v1145_v34  ;;  %1166 = vpow2.f32 %v1020_v29 }
 0x101   : > { %v1149_v39 = vpop.eup %1148  ;;  %v780_v40 = vadd.f32 1.0, %v1147_v37  ;;  %1168 = vpow2.f32 %v1019_v30  ;;  %v1022_v41 = vmul.f32 -1.442695, %v661_v35 }
 0x102   : > { %v1021_v42 = vmul.f32 -1.442695, %v660_v36  ;;  %v1151_v44 = vpop.eup %1150  ;;  %871 = vst.msk [vmem:[%s1587_s10 + $0x50] sm:$0xff] %vm860_vm0, %v1149_v39  ;;  %1170 = vrcp.f32 %v781_v38  ;;  %v625_v45 = vpop.xlane.xlu1 %624 }
 0x103   : > { %v623_v46 = vpop.xlane.xlu0 %622  ;;  %v1153_v7 = vpop.eup %1152  ;;  %874 = vst.msk [vmem:[%s1587_s10 + $0x68] sm:$0xff] %vm860_vm0, %v1151_v44  ;;  %1172 = vrcp.f32 %v780_v40  ;;  %v663_v47 = vadd.f32 %v1564_v43, %v625_v45 }
 0x104   : > { %v662_v48 = vadd.f32 %v1564_v43, %v623_v46  ;;  %v1155_v49 = vpop.eup %1154  ;;  %v783_v8 = vadd.f32 1.0, %v1153_v7  ;;  %1174 = vpow2.f32 %v1022_v41 }
 0x105   : > { %v1157_v50 = vpop.eup %1156  ;;  %873 = vst.msk [vmem:[%s1587_s10 + $0x60] sm:$0xff] %vm860_vm0, %v1155_v49  ;;  %1176 = vpow2.f32 %v1021_v42  ;;  %v1024_v51 = vmul.f32 -1.442695, %v663_v47 }
 0x106   : > { %v1159_v52 = vpop.eup %1158  ;;  %1178 = vrcp.f32 %v783_v8  ;;  %v782_v53 = vadd.f32 1.0, %v1157_v50  ;;  %v1023_v54 = vmul.f32 -1.442695, %v662_v48  ;;  %v629_v55 = vpop.xlane.xlu1 %628 }
 0x107   : > { %v627_v56 = vpop.xlane.xlu0 %626  ;;  %v1161_v57 = vpop.eup %1160  ;;  %v785_v58 = vadd.f32 1.0, %v1159_v52  ;;  %1180 = vpow2.f32 %v1024_v51  ;;  %v665_v59 = vadd.f32 %v1564_v43, %v629_v55 }
 0x108   : > { %v664_v60 = vadd.f32 %v1564_v43, %v627_v56  ;;  %v1163_v61 = vpop.eup %1162  ;;  %1182 = vrcp.f32 %v782_v53  ;;  %v784_v62 = vadd.f32 1.0, %v1161_v57 }
 0x109   : > { %v1165_v63 = vpop.eup %1164  ;;  %876 = vst.msk [vmem:[%s1587_s10 + $0x78] sm:$0xff] %vm860_vm0, %v1163_v61  ;;  %1184 = vrcp.f32 %v785_v58  ;;  %v1026_v0 = vmul.f32 -1.442695, %v665_v59 }
 0x10a   : > { %v1167_v1 = vpop.eup %1166  ;;  %875 = vst.msk [vmem:[%s1587_s10 + $0x70] sm:$0xff] %vm860_vm0, %v1165_v63  ;;  %1186 = vrcp.f32 %v784_v62  ;;  %v1025_v2 = vmul.f32 -1.442695, %v664_v60  ;;  %v633_v3 = vpop.xlane.xlu1 %632 }
 0x10b   : > { %v631_v4 = vpop.xlane.xlu0 %630  ;;  %v1169_v5 = vpop.eup %1168  ;;  %v787_v6 = vadd.f32 1.0, %v1167_v1  ;;  %1188 = vpow2.f32 %v1023_v54  ;;  %v667_v9 = vadd.f32 %v1564_v43, %v633_v3 }
 0x10c   : > { %v666_v10 = vadd.f32 %v1564_v43, %v631_v4  ;;  %v1171_v11 = vpop.eup %1170  ;;  %v786_v12 = vadd.f32 1.0, %v1169_v5  ;;  %1190 = vpow2.f32 %v1026_v0 }
 0x10d   : > { %v1173_v13 = vpop.eup %1172  ;;  %878 = vst.msk [vmem:[%s1587_s10 + $0x88] sm:$0xff] %vm860_vm0, %v1171_v11  ;;  %1192 = vrcp.f32 %v787_v6  ;;  %v1028_v14 = vmul.f32 -1.442695, %v667_v9 }
 0x10e   : > { %v1175_v15 = vpop.eup %1174  ;;  %877 = vst.msk [vmem:[%s1587_s10 + $0x80] sm:$0xff] %vm860_vm0, %v1173_v13  ;;  %1194 = vrcp.f32 %v786_v12  ;;  %v1027_v18 = vmul.f32 -1.442695, %v666_v10 }
 0x10f   : > { %v1177_v16 = vpop.eup %1176  ;;  %v789_v17 = vadd.f32 1.0, %v1175_v15  ;;  %1196 = vpow2.f32 %v1025_v2 }
 0x110   : > { %v1179_v43 = vpop.eup %1178  ;;  %v788_v19 = vadd.f32 1.0, %v1177_v16  ;;  %1198 = vpow2.f32 %v1028_v14 }
 0x111   : > { %v1181_v20 = vpop.eup %1180  ;;  %880 = vst.msk [vmem:[%s1587_s10 + $0x98] sm:$0xff] %vm860_vm0, %v1179_v43  ;;  %1200 = vrcp.f32 %v789_v17 }
 0x112   : > { %v1183_v21 = vpop.eup %1182  ;;  %1202 = vrcp.f32 %v788_v19  ;;  %v791_v22 = vadd.f32 1.0, %v1181_v20 }
 0x113   : > { %v1185_v23 = vpop.eup %1184  ;;  %879 = vst.msk [vmem:[%s1587_s10 + $0x90] sm:$0xff] %vm860_vm0, %v1183_v21  ;;  %1204 = vpow2.f32 %v1027_v18 }
 0x114   : > { %v1187_v24 = vpop.eup %1186  ;;  %882 = vst.msk [vmem:[%s1587_s10 + $0xa8] sm:$0xff] %vm860_vm0, %v1185_v23  ;;  %1206 = vrcp.f32 %v791_v22 }
 0x115   : > { %v1189_v25 = vpop.eup %1188  ;;  %881 = vst.msk [vmem:[%s1587_s10 + $0xa0] sm:$0xff] %vm860_vm0, %v1187_v24 }
 0x116   : > { %v1191_v26 = vpop.eup %1190  ;;  %v790_v27 = vadd.f32 1.0, %v1189_v25 }
 0x117   : > { %v1193_v28 = vpop.eup %1192  ;;  %v793_v29 = vadd.f32 1.0, %v1191_v26 }
 0x118   : > { %v1195_v30 = vpop.eup %1194  ;;  %884 = vst.msk [vmem:[%s1587_s10 + $0xb8] sm:$0xff] %vm860_vm0, %v1193_v28  ;;  %1208 = vrcp.f32 %v790_v27 }
 0x119   : > { %v1197_v31 = vpop.eup %1196  ;;  %883 = vst.msk [vmem:[%s1587_s10 + $0xb0] sm:$0xff] %vm860_vm0, %v1195_v30  ;;  %1210 = vrcp.f32 %v793_v29 }
 0x11a   : > { %v1199_v32 = vpop.eup %1198  ;;  %v792_v33 = vadd.f32 1.0, %v1197_v31 }
 0x11b   : > { %v1201_v34 = vpop.eup %1200  ;;  %v795_v35 = vadd.f32 1.0, %v1199_v32 }
 0x11c   : > { %v1203_v36 = vpop.eup %1202  ;;  %886 = vst.msk [vmem:[%s1587_s10 + $0xc8] sm:$0xff] %vm860_vm0, %v1201_v34  ;;  %1212 = vrcp.f32 %v792_v33 }
 0x11d   : > { %v1205_v37 = vpop.eup %1204  ;;  %885 = vst.msk [vmem:[%s1587_s10 + $0xc0] sm:$0xff] %vm860_vm0, %v1203_v36  ;;  %1214 = vrcp.f32 %v795_v35 }
 0x11e   : > { %v1207_v38 = vpop.eup %1206  ;;  %v794_v39 = vadd.f32 1.0, %v1205_v37 }
 0x11f   : > { %888 = vst.msk [vmem:[%s1587_s10 + $0xd8] sm:$0xff] %vm860_vm0, %v1207_v38 }
 0x120   : > { %1216 = vrcp.f32 %v794_v39 }
 0x122   : > { %v1209_v40 = vpop.eup %1208 }
 0x123   : > { %v1211_v41 = vpop.eup %1210  ;;  %887 = vst.msk [vmem:[%s1587_s10 + $0xd0] sm:$0xff] %vm860_vm0, %v1209_v40 }
 0x124   : > { %890 = vst.msk [vmem:[%s1587_s10 + $0xe8] sm:$0xff] %vm860_vm0, %v1211_v41 }
 0x126   : > { %v1213_v42 = vpop.eup %1212 }
 0x127   : > { %v1215_v44 = vpop.eup %1214  ;;  %889 = vst.msk [vmem:[%s1587_s10 + $0xe0] sm:$0xff] %vm860_vm0, %v1213_v42 }
 0x128   : > { %892 = vst.msk [vmem:[%s1587_s10 + $0xf8] sm:$0xff] %vm860_vm0, %v1215_v44 }
 0x12a   : > { %v1217_v45 = vpop.eup %1216 }
 0x12b   : > { %891 = vst.msk [vmem:[%s1587_s10 + $0xf0] sm:$0xff] %vm860_vm0, %v1217_v45 }
 0x12c PF: > { %s17_s19 = sadd.s32 1, %s1298_s19   ;;  %s1696_s14 = smov %s1282_s15 }
 0x12d   : > { %p14_p9 = scmp.ge.s32.totalorder %s17_s19, 4   ;;  %s1697_s15 = smov %s1286_s16 }
 0x12e   : > { %s1698_s16 = smov %s1375_s25  ;;  %s1699_s17 = smov %s1294_s18 }
 0x12f   : > { %s1700_s18 = smov %s1702_s20  ;;  %16 = sbr.rel (!%p14_p9) target bundleno = 6 (0x6), region = 83 }
 0x136   :  { %915 = vsyncpa [#allocation5], 1 }
 0x137   :  { %917 = vsyncpa [#allocation5 + $0x1], 1 }

</bundles_post_ra>
